<compile_context>
chip_gen: v7x
topology: tpu7x:2x2x1
jax: 0.10.0
libtpu: 0.0.40
codegen_flags: <defaults>
</compile_context>

<pallas_src>
import numpy as np
import jax
import jax.numpy as jnp
from jax.experimental import pallas as pl
from jax.experimental.pallas import tpu as pltpu


def _round_up(a: int, b: int) -> int:
    return (a + b - 1) // b * b


def _upsample_kernel(x_ref, b_ref, w_main_ref, w_edge_ref, o_ref):
    # x_ref     : (TR, 128)    input tile (each block DMA'd from HBM once)
    # b_ref     : (1, TR, 8)   boundary cols: [...,0]=prev-tile last col,
    #                          [...,1]=next-tile first col (clamped), rest 0
    # w_main_ref: (128, TNo)   resident shift-invariant local weight
    # w_edge_ref: (8,  TNo)    resident boundary weight (rows 0/1 nonzero)
    # o_ref     : (TR, TNo)    lane-dense output tile
    acc = jnp.dot(x_ref[...], w_main_ref[...],
                  preferred_element_type=jnp.float32)
    acc = acc + jnp.dot(b_ref[0], w_edge_ref[...],
                        preferred_element_type=jnp.float32)
    o_ref[...] = acc.astype(o_ref.dtype)


def conv_tr_upsample_1d(x, stride: int, causal: bool = False):
    """Forward of ConvTrUpsample1d(stride, causal=causal, learnt=False).

    x: (B, C, T) float32  ->  (B, C, T*stride) float32
    """
    # TODO(synk): learnt=True / channel_wise path (trained ConvTranspose1d
    # weights, grouped channels) is not implemented; this is the non-learnt
    # normalized upsample.
    B, C, T = x.shape
    assert stride >= 1 and T >= 1
    padding_total = stride                       # kernel_size - stride
    p = 0 if causal else padding_total - padding_total // 2   # left trim

    TNi = 128                     # input-time tile width (lane aligned)
    TNo = TNi * stride            # output-time tile width, multiple of 128
    T_out = T * stride
    R = B * C
    rows = x.reshape(R, T).astype(jnp.float32)

    # ---- generation-aware VMEM budget -> row-tile size ----------------------
    try:
        vmem_cap = int(pltpu.get_tpu_info().vmem_capacity_bytes)
    except Exception:
        vmem_cap = 64 * 1024 * 1024            # conservative (v7x) fallback
    budget = int(vmem_cap * 0.625)             # ~40 MiB v7x, ~80 MiB v5e/v6e
    vmem_limit = int(vmem_cap * 0.70)

    w_bytes = 2 * (TNi + 8) * TNo * 4          # both weights, double-buffered
    row_bytes = 4 * (2 * TNi + 2 * 8 + 2 * TNo)  # per tile row (both buffers)
    tr_fit = (budget - w_bytes) // row_bytes
    if tr_fit < 8:
        # TODO(synk): for huge strides a smaller effective TNi would be needed.
        raise ValueError(
            f"stride={stride} too large for the VMEM tiling "
            f"(budget={budget} bytes, weight bytes={w_bytes})")
    TR_cap = int(min(1024, tr_fit))

    if R <= TR_cap:
        TR, R_pad = R, R                       # single full-extent row tile
    else:
        hi = TR_cap - TR_cap % 8
        TR = 0
        for cand in range(hi, max(hi // 2, 8) - 1, -8):   # prefer divisor of R
            if R % cand == 0:
                TR = cand
                break
        if TR == 0:
            TR = hi
        R_pad = _round_up(R, TR)

    T_pad = _round_up(T, TNi)
    nq = T_pad // TNi
    T_out_pad = T_pad * stride

    # ---- input (pad only on the ragged fallback path) -----------------------
    needs_pad = (R_pad != R) or (T_pad != T)
    if needs_pad:
        # Extra HBM pass over the (small) input; the copy-free fast path is
        # taken whenever T % 128 == 0 and the row count fits the tiling.
        xw = jnp.pad(rows, ((0, R_pad - R), (0, T_pad - T)), mode="edge")
    else:
        xw = rows

    # ---- tiny boundary-column operand (replaces re-reading whole blocks) ----
    q_idx = np.arange(nq)
    idx_prev = np.maximum(q_idx * TNi - 1, 0)          # prev tile's last column
    idx_next = np.minimum((q_idx + 1) * TNi, T - 1)    # next tile's first column
    prev_cols = xw[:, idx_prev]                        # (R_pad, nq)
    next_cols = xw[:, idx_next]                        # (R_pad, nq)
    bcols = jnp.stack([prev_cols, next_cols], axis=0)  # (2, R_pad, nq)
    bcols = jnp.transpose(bcols, (2, 1, 0))            # (nq, R_pad, 2)
    bcols = jnp.pad(bcols, ((0, 0), (0, 0), (0, 6)))   # (nq, R_pad, 8)

    # ---- shift-invariant local weights (resident, fetched once) -------------
    #   out[:, jj] = 0.5*(x[t0-1] + x[t0]),  t0 = q*128 + u,  u = (jj+p)//stride
    jj = np.arange(TNo)
    u = (jj + p) // stride                             # in [0, 128]
    v = np.arange(TNi)[:, None]
    w_main = (((v == u - 1) | (v == u)).astype(np.float32) * 0.5)  # (128, TNo)
    w_edge = np.zeros((8, TNo), np.float32)
    w_edge[0] = 0.5 * (u == 0)        # uses previous tile's last column
    w_edge[1] = 0.5 * (u == TNi)      # uses next tile's first column (clamped)
    w_main = jnp.asarray(w_main)
    w_edge = jnp.asarray(w_edge)

    out = pl.pallas_call(
        _upsample_kernel,
        out_shape=jax.ShapeDtypeStruct((R_pad, T_out_pad), jnp.float32),
        grid_spec=pltpu.PrefetchScalarGridSpec(
            num_scalar_prefetch=0,
            grid=(R_pad // TR, nq),
            in_specs=[
                pl.BlockSpec((TR, TNi), lambda r, q: (r, q)),      # x tile (read once)
                pl.BlockSpec((1, TR, 8), lambda r, q: (q, r, 0)),  # boundary cols
                pl.BlockSpec((TNi, TNo), lambda r, q: (0, 0)),     # resident weight
                pl.BlockSpec((8, TNo), lambda r, q: (0, 0)),       # resident edge wgt
            ],
            out_specs=pl.BlockSpec((TR, TNo), lambda r, q: (r, q)),
        ),
        compiler_params=pltpu.CompilerParams(
            dimension_semantics=("parallel", "parallel"),
            vmem_limit_bytes=vmem_limit,
        ),
    )(xw, bcols, w_main, w_edge)

    if needs_pad:
        # TODO(synk): ragged tail could use a masked last block instead of a
        # padded output + slice; only hit when T % 128 != 0 or rows were padded.
        out = out[:R, :T_out]
    return out.reshape(B, C, T_out)


def _reference(x, stride: int, causal: bool = False):
    """NumPy mirror of the PyTorch forward (explicit transposed conv + norm)."""
    x = np.asarray(x, dtype=np.float32)
    B, C, T = x.shape
    ks = 2 * stride
    rows = x.reshape(B * C, T)
    L_full = (T - 1) * stride + ks
    y = np.zeros((B * C, L_full), np.float32)
    norm = np.zeros((1, L_full), np.float32)
    for t in range(T):
        y[:, t * stride:t * stride + ks] += rows[:, t:t + 1]
        norm[:, t * stride:t * stride + ks] += 1.0
    y = y / norm
    padding_total = ks - stride
    if causal:
        pad_l, pad_r = 0, padding_total          # trim_right_ratio = 1.0
    else:
        pad_r = padding_total // 2
        pad_l = padding_total - pad_r
    y = y[:, pad_l:L_full - pad_r]
    return y.reshape(B, C, T * stride)


if __name__ == "__main__":
    key = jax.random.PRNGKey(0)
    B, C, T = 2, 4, 16
    x = jax.random.normal(key, (B, C, T), dtype=jnp.float32)

    # default config: causal=False, stride=2  (ragged-T fallback path, T < 128)
    y = jax.block_until_ready(conv_tr_upsample_1d(x, stride=2, causal=False))
    y_ref = _reference(x, stride=2, causal=False)
    assert y.shape == (B, C, 32), y.shape
    err = float(np.max(np.abs(np.asarray(y) - y_ref)))
    assert err < 1e-5, err

    # causal + odd stride (asymmetric trim / left-clamp edge cases)
    y2 = jax.block_until_ready(conv_tr_upsample_1d(x, stride=3, causal=True))
    y2_ref = _reference(x, stride=3, causal=True)
    assert y2.shape == (B, C, 48), y2.shape
    err2 = float(np.max(np.abs(np.asarray(y2) - y2_ref)))
    assert err2 < 1e-5, err2

    # copy-free fast path: T multiple of 128, two time tiles -> exercises the
    # cross-tile prev/next boundary columns and the right clamp via next_col.
    B3, C3, T3 = 2, 3, 256
    x3 = jax.random.normal(jax.random.PRNGKey(0), (B3, C3, T3), dtype=jnp.float32)
    y3 = jax.block_until_ready(conv_tr_upsample_1d(x3, stride=2, causal=False))
    y3_ref = _reference(x3, stride=2, causal=False)
    assert y3.shape == (B3, C3, 512), y3.shape
    err3 = float(np.max(np.abs(np.asarray(y3) - y3_ref)))
    assert err3 < 1e-5, err3

    print("KERNEL_OK")
</pallas_src>

<mosaic_0001>
module attributes {stable_mosaic.version = 11 : i64} {
  func.func @_upsample_kernel(%arg0: i32, %arg1: i32, %arg2: memref<8x128xf32, #tpu.memory_space<vmem>>, %arg3: memref<1x8x8xf32, #tpu.memory_space<vmem>>, %arg4: memref<128x256xf32, #tpu.memory_space<vmem>>, %arg5: memref<8x256xf32, #tpu.memory_space<vmem>>, %arg6: memref<8x256xf32, #tpu.memory_space<vmem>>) attributes {dimension_semantics = [#tpu.dimension_semantics<parallel>, #tpu.dimension_semantics<parallel>], iteration_bounds = array<i64: 1, 1>, scalar_prefetch = 0 : i64, scratch_operands = 0 : i64, tpu.core_type = #tpu.core_type<tc>, window_params = [{transform_indices = @transform_0, window_bounds = array<i64: 8, 128>}, {transform_indices = @transform_1, window_bounds = array<i64: 1, 8, 8>}, {pipeline_mode = #tpu.pipeline_mode<synchronous>, transform_indices = @transform_2, window_bounds = array<i64: 128, 256>}, {pipeline_mode = #tpu.pipeline_mode<synchronous>, transform_indices = @transform_3, window_bounds = array<i64: 8, 256>}, {transform_indices = @transform_4, window_bounds = array<i64: 8, 256>}]} {
    %c0 = arith.constant 0 : index
    %c0_0 = arith.constant 0 : index
    %0 = vector.load %arg2[%c0, %c0_0] : memref<8x128xf32, #tpu.memory_space<vmem>>, vector<8x128xf32>
    %c0_1 = arith.constant 0 : index
    %c0_2 = arith.constant 0 : index
    %1 = vector.load %arg4[%c0_1, %c0_2] : memref<128x256xf32, #tpu.memory_space<vmem>>, vector<128x256xf32>
    %cst = arith.constant dense<0.000000e+00> : vector<8x256xf32>
    %2 = tpu.matmul %0, %1, %cst {dimension_numbers = #tpu.dot_dimension_numbers<[1], [0], [0], [1], [0, 0, 1, 1], [], []>} : vector<8x128xf32>, vector<128x256xf32>, vector<8x256xf32> -> vector<8x256xf32>
    %c0_3 = arith.constant 0 : index
    %c0_4 = arith.constant 0 : index
    %c0_5 = arith.constant 0 : index
    %3 = vector.load %arg3[%c0_3, %c0_4, %c0_5] : memref<1x8x8xf32, #tpu.memory_space<vmem>>, vector<1x8x8xf32>
    %4 = vector.shape_cast %3 : vector<1x8x8xf32> to vector<8x8xf32>
    %c0_6 = arith.constant 0 : index
    %c0_7 = arith.constant 0 : index
    %5 = vector.load %arg5[%c0_6, %c0_7] : memref<8x256xf32, #tpu.memory_space<vmem>>, vector<8x256xf32>
    %cst_8 = arith.constant dense<0.000000e+00> : vector<8x256xf32>
    %6 = tpu.matmul %4, %5, %cst_8 {dimension_numbers = #tpu.dot_dimension_numbers<[1], [0], [0], [1], [0, 0, 1, 1], [], []>} : vector<8x8xf32>, vector<8x256xf32>, vector<8x256xf32> -> vector<8x256xf32>
    %7 = arith.addf %2, %6 : vector<8x256xf32>
    %c0_9 = arith.constant 0 : index
    %c0_10 = arith.constant 0 : index
    %8 = vector.load %arg6[%c0_9, %c0_10] : memref<8x256xf32, #tpu.memory_space<vmem>>, vector<8x256xf32>
    tpu.vector_store %arg6[%c0_9, %c0_10], %7 {strides = array<i32>} : memref<8x256xf32, #tpu.memory_space<vmem>>, vector<8x256xf32>,
    return
  }
  func.func @transform_0(%arg0: i32, %arg1: i32) -> (i32, i32) {
    %c0_i32 = arith.constant 0 : i32
    return %arg0, %arg1 : i32, i32
  }
  func.func @transform_1(%arg0: i32, %arg1: i32) -> (i32, i32, i32) {
    %c0_i32 = arith.constant 0 : i32
    %c0_i32_0 = arith.constant 0 : i32
    return %arg1, %arg0, %c0_i32 : i32, i32, i32
  }
  func.func @transform_2(%arg0: i32, %arg1: i32) -> (i32, i32) {
    %c0_i32 = arith.constant 0 : i32
    %c0_i32_0 = arith.constant 0 : i32
    %c0_i32_1 = arith.constant 0 : i32
    return %c0_i32, %c0_i32_0 : i32, i32
  }
  func.func @transform_3(%arg0: i32, %arg1: i32) -> (i32, i32) {
    %c0_i32 = arith.constant 0 : i32
    %c0_i32_0 = arith.constant 0 : i32
    %c0_i32_1 = arith.constant 0 : i32
    return %c0_i32, %c0_i32_0 : i32, i32
  }
  func.func @transform_4(%arg0: i32, %arg1: i32) -> (i32, i32) {
    %c0_i32 = arith.constant 0 : i32
    return %arg0, %arg1 : i32, i32
  }
}

</mosaic_0001>

<bundles_post_ra>
// kernel: tpu_custom_call.1
= control target key start
LH: loop header
LB: loop body
LE: loop exit
PB: predicated region body
PF: predicated region fallthrough
CT: control target
= control target key end

     0   :  { %9 = vsyncpa [#allocation3], 0  ;;  %s522_s0 = inlined_call_operand.hbm [shape: f32[8,128], index: 0, kind: input, shape index: {}]   ;;  %s523_s1 = inlined_call_operand.hbm [shape: f32[1,8,8], index: 1, kind: input, shape index: {}]   ;;  %s524_s2 = inlined_call_operand.hbm [shape: f32[128,256], index: 2, kind: input, shape index: {}]   ;;  %s525_s3 = inlined_call_operand.hbm [shape: f32[8,256], index: 3, kind: input, shape index: {}]   ;;  %s526_s4 = inlined_call_operand.hbm [shape: f32[8,256], index: 4, kind: output, shape index: {}]  }
   0x1   :  { %10 = vsyncpa [#allocation6], 0 }
   0x2   :  { %11 = vsyncpa [#allocation9], 0 }
   0x3   :  { %12 = vsyncpa [#allocation4], 0  ;;  %s429_s15 = smov [#allocation5]   ;;  %s430_s17 = smov [#allocation2]  }
   0x4   :  { %s29_s16 = sshll.u32 %s429_s15, 4  ;;  %s19_s18 = sshll.u32 %s430_s17, 4  ;;  %s30_s16 = int_to_ptr.vmem [resolvable:$true] %s29_s16  ;;  %s20_s18 = int_to_ptr.vmem [resolvable:$true] %s19_s18 }
   0x5   :  { %s311_s21 = scalar_lea.hbm %s523_s1, 128 }
   0x6   :  { %p312_p0 = scmp.ne.s32.totalorder %s523_s1, %s311_s21  ;;  %p315_p1 = scmp.lt.u32.totalorder %s311_s21, %s523_s1 }
   0x8   :  { %p317_p2 = pnand %p315_p1, %p312_p0 }
   0xa   :  { %320 = shalt.err (!%p317_p2)
}
   0xb   :  { %s321_s26 = scalar_lea.vmem %s30_s16, 128  ;;  %p326_p4 = scmp.lt.s32.totalorder %s30_s16, %s30_s16 }
   0xc   :  { %p322_p3 = scmp.ne.s32.totalorder %s30_s16, %s321_s26  ;;  %p327_p5 = scmp.lt.s32.totalorder %s321_s26, %s321_s26 }
   0xe   :  { %p328_p6 = por %p327_p5, %p326_p4 }
  0x10   :  { %p329_p7 = pnand %p328_p6, %p322_p3 }
  0x12   :  { %332 = shalt.err (!%p329_p7)
}
  0x13   :  { %32 = dma.hbm_to_vmem [thread:$0]  %s523_s1, 128, %s30_s16, [#allocation6]  }
  0x14   :  { %s333_s5 = scalar_lea.hbm %s522_s0, 128 }
  0x15   :  { %p334_p8 = scmp.ne.s32.totalorder %s522_s0, %s333_s5  ;;  %p337_p9 = scmp.lt.u32.totalorder %s333_s5, %s522_s0 }
  0x17   :  { %p339_p10 = pnand %p337_p9, %p334_p8 }
  0x19   :  { %342 = shalt.err (!%p339_p10)
}
  0x1a   :  { %s343_s10 = scalar_lea.vmem %s20_s18, 128  ;;  %p348_p12 = scmp.lt.s32.totalorder %s20_s18, %s20_s18 }
  0x1b   :  { %p344_p11 = scmp.ne.s32.totalorder %s20_s18, %s343_s10  ;;  %p349_p13 = scmp.lt.s32.totalorder %s343_s10, %s343_s10 }
  0x1d   :  { %p350_p0 = por %p349_p13, %p348_p12 }
  0x1f   :  { %p351_p1 = pnand %p350_p0, %p344_p11 }
  0x21   :  { %354 = shalt.err (!%p351_p1)
}
  0x22   :  { %22 = dma.hbm_to_vmem [thread:$0]  %s522_s0, 128, %s20_s18, [#allocation3]  }
  0x23   :  { %s431_s12 = smov [#allocation7]   ;;  %s355_s16 = scalar_lea.hbm %s524_s2, 4096 }
  0x24   :  { %s38_s13 = sshll.u32 %s431_s12, 4  ;;  %p356_p2 = scmp.ne.s32.totalorder %s524_s2, %s355_s16  ;;  %s39_s13 = int_to_ptr.vmem [resolvable:$true] %s38_s13 }
  0x25   :  { %p359_p3 = scmp.lt.u32.totalorder %s355_s16, %s524_s2 }
  0x27   :  { %p361_p4 = pnand %p359_p3, %p356_p2 }
  0x29   :  { %364 = shalt.err (!%p361_p4)
}
  0x2a   :  { %s365_s22 = scalar_lea.vmem %s39_s13, 4096  ;;  %p370_p6 = scmp.lt.s32.totalorder %s39_s13, %s39_s13 }
  0x2b   :  { %p366_p5 = scmp.ne.s32.totalorder %s39_s13, %s365_s22  ;;  %p371_p7 = scmp.lt.s32.totalorder %s365_s22, %s365_s22 }
  0x2d   :  { %p372_p8 = por %p371_p7, %p370_p6 }
  0x2f   :  { %p373_p9 = pnand %p372_p8, %p366_p5 }
  0x31   :  { %376 = shalt.err (!%p373_p9)
}
  0x32   :  { %s432_s0 = smov 256   ;;  %s433_s18 = smov 16  }
  0x33   :  { %44 = dma.hbm_to_vmem [thread:$0]  %s524_s2, 4096, %s39_s13, [#allocation6], %s432_s0, %s432_s0, %s433_s18  }
  0x34   :  { %s434_s25 = smov [#allocation8]   ;;  %s377_s29 = scalar_lea.hbm %s525_s3, 256 }
  0x35   :  { %s51_s26 = sshll.u32 %s434_s25, 4  ;;  %p378_p10 = scmp.ne.s32.totalorder %s525_s3, %s377_s29  ;;  %s52_s26 = int_to_ptr.vmem [resolvable:$true] %s51_s26 }
  0x36   :  { %p381_p11 = scmp.lt.u32.totalorder %s377_s29, %s525_s3 }
  0x38   :  { %p383_p12 = pnand %p381_p11, %p378_p10 }
  0x3a   :  { %386 = shalt.err (!%p383_p12)
}
  0x3b   :  { %s387_s8 = scalar_lea.vmem %s52_s26, 256  ;;  %p392_p0 = scmp.lt.s32.totalorder %s52_s26, %s52_s26 }
  0x3c   :  { %p388_p13 = scmp.ne.s32.totalorder %s52_s26, %s387_s8  ;;  %p393_p1 = scmp.lt.s32.totalorder %s387_s8, %s387_s8 }
  0x3e   :  { %p394_p2 = por %p393_p1, %p392_p0 }
  0x40   :  { %p395_p3 = pnand %p394_p2, %p388_p13 }
  0x42   :  { %398 = shalt.err (!%p395_p3)
}
  0x43   :  { %54 = dma.hbm_to_vmem [thread:$0]  %s525_s3, 256, %s52_s26, [#allocation9]  }
  0x44   :  { %421 = dma.done.wait [#allocation3], 128  }
  0x45   :  { %422 = vsyncadd [#allocation3], 4294967168 }
  0x46   :  { %423 = dma.done.wait [#allocation6], 4224  }
  0x47   :  { %424 = vsyncadd [#allocation6], 4294963072 }
  0x48   :  { %425 = dma.done.wait [#allocation9], 256  }
  0x49   :  { %426 = vsyncadd [#allocation9], 4294967040  ;;  %v435_v0 = vmov 0.0   ;;  %v69_v1 = vld [vmem:[#allocation7 + $0x8] sm:$0xff]  ;;  %v71_v2 = vld [vmem:[#allocation7 + $0x18] sm:$0xff]  ;;  %vm103_vm0 = vcmask 64512  }
  0x4a   :  { %171 = vmatprep.mubr.f32.mxu1 %v435_v0  ;;  %242 = vmatprep.mubr.f32.mxu0 %v435_v0  ;;  %v68_v3 = vld [vmem:[#allocation7] sm:$0xff]  ;;  %v269_v4 = vpack.c.bf16 %v71_v2, %v69_v1  ;;  %v70_v5 = vld [vmem:[#allocation7 + $0x10] sm:$0xff]  ;;  %v73_v6 = vld [vmem:[#allocation7 + $0x28] sm:$0xff]  ;;  %s436_s3 = smov [#allocation10]  }
  0x4b   :  { %v75_v7 = vld [vmem:[#allocation7 + $0x38] sm:$0xff]  ;;  %v271_v8 = vpack.c.bf16 %v70_v5, %v68_v3  ;;  %v72_v10 = vld [vmem:[#allocation7 + $0x20] sm:$0xff]  ;;  %v74_v11 = vld [vmem:[#allocation7 + $0x30] sm:$0xff]  ;;  %s257_s10 = sshll.u32 %s436_s3, 4  ;;  %s258_s10 = int_to_ptr.vmem [resolvable:$true] %s257_s10 }
  0x4c   :  { %v273_v9 = vpack.c.bf16 %v75_v7, %v73_v6  ;;  %v77_v12 = vld [vmem:[#allocation7 + $0x48] sm:$0xff]  ;;  %270 = vmatprep.subr.bf16.mxu0 %v269_v4  ;;  %v79_v13 = vld [vmem:[#allocation7 + $0x58] sm:$0xff]  ;;  %v275_v14 = vpack.c.bf16 %v74_v11, %v72_v10  ;;  %v76_v16 = vld [vmem:[#allocation7 + $0x40] sm:$0xff]  ;;  %s399_s1 = scalar_lea.vmem %s258_s10, 256  ;;  %p404_p5 = scmp.lt.s32.totalorder %s258_s10, %s258_s10 }
  0x4d   :  { %272 = vmatpush1.bf16.msra.mxu0 %v271_v8  ;;  %v277_v15 = vpack.c.bf16 %v79_v13, %v77_v12  ;;  %v78_v17 = vld [vmem:[#allocation7 + $0x50] sm:$0xff]  ;;  %v81_v18 = vld [vmem:[#allocation7 + $0x68] sm:$0xff]  ;;  %v83_v19 = vld [vmem:[#allocation7 + $0x78] sm:$0xff]  ;;  %p400_p4 = scmp.ne.s32.totalorder %s258_s10, %s399_s1  ;;  %p405_p6 = scmp.lt.s32.totalorder %s399_s1, %s399_s1 }
  0x4e   :  { %274 = vmatprep.subr.bf16.mxu0 %v273_v9  ;;  %v279_v20 = vpack.c.bf16 %v78_v17, %v76_v16  ;;  %v281_v21 = vpack.c.bf16 %v83_v19, %v81_v18  ;;  %v80_v22 = vld [vmem:[#allocation7 + $0x60] sm:$0xff]  ;;  %v82_v23 = vld [vmem:[#allocation7 + $0x70] sm:$0xff]  ;;  %v85_v24 = vld [vmem:[#allocation7 + $0x88] sm:$0xff] }
  0x4f   :  { %v87_v25 = vld [vmem:[#allocation7 + $0x98] sm:$0xff]  ;;  %v102_v26 = vld [vmem:[#allocation8 + $0x8] sm:$0xff]  ;;  %v101_v27 = vld [vmem:[#allocation8] sm:$0xff]  ;;  %v283_v29 = vpack.c.bf16 %v82_v23, %v80_v22  ;;  %p406_p7 = por %p405_p6, %p404_p5 }
  0x50   :  { %107 = vmatprep.subr.mxu1 %v102_v26  ;;  %v100_v28 = vld [vmem:[#allocation5] sm:$0xff]  ;;  %v285_v30 = vpack.c.bf16 %v87_v25, %v85_v24  ;;  %v84_v31 = vld [vmem:[#allocation7 + $0x80] sm:$0xff]  ;;  %v86_v32 = vld [vmem:[#allocation7 + $0x90] sm:$0xff] }
  0x51   :  { %276 = vmatpush1.bf16.msra.mxu0 %v275_v14  ;;  %108 = vmatpush1.msra.mxu1 %v101_v27  ;;  %v89_v33 = vld [vmem:[#allocation7 + $0xa8] sm:$0xff]  ;;  %v91_v34 = vld [vmem:[#allocation7 + $0xb8] sm:$0xff]  ;;  %v287_v35 = vpack.c.bf16 %v86_v32, %v84_v31  ;;  %v88_v37 = vld [vmem:[#allocation7 + $0xa0] sm:$0xff]  ;;  %p407_p8 = pnand %p406_p7, %p400_p4 }
  0x52   :  { %278 = vmatprep.subr.bf16.mxu0 %v277_v15  ;;  %268 = vmatmul.mubr.msk.f32.vlgmr.msra.gmra.mrb[0].mxu1 %vm103_vm0, %v100_v28  ;;  %v289_v36 = vpack.c.bf16 %v91_v34, %v89_v33  ;;  %v90_v38 = vld [vmem:[#allocation7 + $0xb0] sm:$0xff]  ;;  %v93_v39 = vld [vmem:[#allocation7 + $0xc8] sm:$0xff]  ;;  %v95_v40 = vld [vmem:[#allocation7 + $0xd8] sm:$0xff] }
  0x53   :  { %v291_v41 = vpack.c.bf16 %v90_v38, %v88_v37  ;;  %v293_v42 = vpack.c.bf16 %v95_v40, %v93_v39  ;;  %v92_v43 = vld [vmem:[#allocation7 + $0xc0] sm:$0xff]  ;;  %v94_v44 = vld [vmem:[#allocation7 + $0xd0] sm:$0xff]  ;;  %v97_v45 = vld [vmem:[#allocation7 + $0xe8] sm:$0xff] }
  0x54   :  { %v99_v46 = vld [vmem:[#allocation7 + $0xf8] sm:$0xff]  ;;  %v295_v47 = vpack.c.bf16 %v94_v44, %v92_v43  ;;  %v96_v49 = vld [vmem:[#allocation7 + $0xe0] sm:$0xff]  ;;  %v98_v50 = vld [vmem:[#allocation7 + $0xf0] sm:$0xff] }
  0x55   :  { %280 = vmatpush1.bf16.msra.mxu0 %v279_v20  ;;  %v297_v48 = vpack.c.bf16 %v99_v46, %v97_v45  ;;  %v299_v51 = vpack.c.bf16 %v98_v50, %v96_v49  ;;  %v67_v52 = vld [vmem:[#allocation2] sm:$0xff] }
  0x56   :  { %282 = vmatprep.subr.bf16.mxu0 %v281_v21 }
  0x59   :  { %284 = vmatpush1.bf16.msra.mxu0 %v283_v29 }
  0x5a   :  { %286 = vmatprep.subr.bf16.mxu0 %v285_v30 }
  0x5d   :  { %288 = vmatpush1.bf16.msra.mxu0 %v287_v35 }
  0x5e   :  { %290 = vmatprep.subr.bf16.mxu0 %v289_v36 }
  0x61   :  { %292 = vmatpush1.bf16.msra.mxu0 %v291_v41 }
  0x62   :  { %294 = vmatprep.subr.bf16.mxu0 %v293_v42 }
  0x65   :  { %296 = vmatpush1.bf16.msra.mxu0 %v295_v47 }
  0x66   :  { %298 = vmatprep.subr.bf16.mxu0 %v297_v48 }
  0x69   :  { %300 = vmatpush1.bf16.msra.mxu0 %v299_v51 }
  0x6c   :  { %243 = vmatmul.mubr.f32.vlgmr.msra.gmra.mrb[0].mxu0 %v67_v52 }
 0x125   :  { %v173_v53 = vpop.f32.mrb[0].mxu1 }
 0x126   :  { %v175_v54 = vpop.f32.mrb[1].mxu1 }
 0x13f   :  { %v244_v55 = vpop.f32.mrb[0].mxu0 }
 0x140   :  { %v245_v56 = vadd.f32 %v244_v55, %v173_v53  ;;  %v246_v57 = vpop.f32.mrb[1].mxu0 }
 0x141   :  { %v247_v58 = vadd.f32 %v246_v57, %v175_v54 }
 0x142   :  { %249 = vst [vmem:[#allocation10] sm:$0xff] %v245_v56 }
 0x143   :  { %250 = vst [vmem:[#allocation10 + $0x8] sm:$0xff] %v247_v58 }
 0x144   :  { %410 = shalt.err (!%p407_p8)
}
 0x145   :  { %s411_s13 = scalar_lea.hbm %s526_s4, 256 }
 0x146   :  { %p412_p9 = scmp.ne.s32.totalorder %s526_s4, %s411_s13  ;;  %p415_p10 = scmp.lt.u32.totalorder %s411_s13, %s526_s4 }
 0x148   :  { %p417_p11 = pnand %p415_p10, %p412_p9 }
 0x14a   :  { %420 = shalt.err (!%p417_p11)
}
 0x14b   :  { %260 = dma.vmem_to_hbm [thread:$0]  %s258_s10, 256, %s526_s4, [#allocation4]  }
 0x14c   :  { %427 = dma.done.wait [#allocation4], 256  }
 0x14d   :  { %428 = vsyncadd [#allocation4], 4294967040 }
 0x14e   :  { %264 = vsyncpa [#allocation3], 1 }
 0x14f   :  { %265 = vsyncpa [#allocation6], 1 }
 0x150   :  { %266 = vsyncpa [#allocation9], 1 }
 0x151   :  { %267 = vsyncpa [#allocation4], 1 }

</bundles_post_ra>
